<compile_context>
chip_gen: v6e
topology: v6e:2x2x1
jax: 0.10.0
libtpu: 0.0.40
codegen_flags: <defaults>
</compile_context>

<pallas_src>
import jax
import jax.numpy as jnp
from jax.experimental import pallas as pl
from jax.experimental.pallas import tpu as pltpu  # noqa: F401  (kept for TPU-specific tuning hooks)


# ----------------------------------------------------------------------------
# Fused Pallas kernel: GraphSAGE x L  ->  max pool  ->  FeedForwardNN logits
# ----------------------------------------------------------------------------
def fused_forward_kernel(adj_ref, h_ref, wg_ref, bg_ref,
                         wc1_ref, bc1_ref, wc2_ref, bc2_ref, o_ref):
    """Whole-batch fused forward.

    adj_ref : (B, N, N)  f32   dense adjacency per graph (self loops included)
    h_ref   : (B*N, D)   bf16  embedded node features, graphs stacked on rows
    wg_ref  : (L, 2D, D) bf16  merged GraphSAGE weights [W_self; W_neigh]
    bg_ref  : (L, 1, D)  f32   GraphSAGE biases
    wc1_ref : (D, D)     bf16  classifier hidden weight
    bc1_ref : (1, D)     f32   classifier hidden bias
    wc2_ref : (D, 128)   bf16  classifier output weight (class dim zero-padded)
    bc2_ref : (1, 128)   f32   classifier output bias (class dim zero-padded)
    o_ref   : (B, 128)   f32   lane-dense logits (first 6 lanes are real classes)
    """
    B, N, _ = adj_ref.shape
    _, D = h_ref.shape
    L = wg_ref.shape[0]

    # Mean-aggregator normalization: degree is layer-invariant, so row-normalize
    # the adjacency once.  Reciprocal goes to the EUP slot; MXU gets bf16.
    adj = adj_ref[...]                                                    # (B, N, N) f32
    deg = jnp.maximum(jnp.sum(adj, axis=-1, keepdims=True), 1.0)
    adj_n = (adj * pl.reciprocal(deg, approx=True)).astype(jnp.bfloat16)  # (B, N, N)

    h = h_ref[...]                                                        # (B*N, D) bf16

    # --- GraphSAGE layers (static unrolled), activation = ReLU ---------------
    for layer in range(L):
        # Neighbor mean aggregation per graph (tiny static loop over B graphs).
        neigh = jnp.concatenate(
            [jnp.dot(adj_n[b], h[b * N:(b + 1) * N, :],
                     preferred_element_type=jnp.float32)
             for b in range(B)], axis=0).astype(jnp.bfloat16)             # (B*N, D)
        # Merged self + neighbor transform: (B*N, 2D) @ (2D, D), f32 accumulate.
        cat = jnp.concatenate([h, neigh], axis=-1)                        # (B*N, 2D)
        out = jnp.dot(cat, wg_ref[layer],
                      preferred_element_type=jnp.float32) + bg_ref[layer]
        h = jnp.maximum(out, 0.0).astype(jnp.bfloat16)                    # ReLU

    # --- Max graph pooling -> (B, D), then batched 2-layer MLP ----------------
    # TODO(synk): add a node mask here if graphs are ever padded to N nodes
    # (ReLU'd pad features >= 0 could otherwise win the max).
    pooled = jnp.concatenate(
        [jnp.max(h[b * N:(b + 1) * N, :], axis=0, keepdims=True)
         for b in range(B)], axis=0)                                      # (B, D) bf16

    hid = jnp.dot(pooled, wc1_ref[...],
                  preferred_element_type=jnp.float32) + bc1_ref[...]
    hid = jnp.maximum(hid, 0.0).astype(jnp.bfloat16)
    logits = jnp.dot(hid, wc2_ref[...],
                     preferred_element_type=jnp.float32) + bc2_ref[...]   # (B, 128) f32
    o_ref[...] = logits.astype(o_ref.dtype)


# ----------------------------------------------------------------------------
# Full forward (matches TextClassifier.forward semantics)
# ----------------------------------------------------------------------------
def text_classifier_forward(params, token_ids, adj, tgt=None, require_loss=True):
    B, N = token_ids.shape
    D = params["emb"].shape[1]
    C = params["clf_w2"].shape[1]
    C_PAD = 128  # lane-dense padded class dim

    # Graph embedding initialization: word-embedding lookup (glue in JAX).
    h = jnp.take(params["emb"], token_ids.reshape(-1), axis=0)            # (B*N, D)
    h = h.astype(jnp.bfloat16)
    # TODO(synk): word_dropout / rnn_dropout omitted (inference path, inactive).

    # Merge GraphSAGE self/neighbor weights -> (L, 2D, D) bf16; biases f32.
    gnn_w = jnp.stack([jnp.concatenate([ws, wn], axis=0)
                       for ws, wn, _ in params["gnn_layers"]], axis=0).astype(jnp.bfloat16)
    gnn_b = jnp.stack([b for _, _, b in params["gnn_layers"]], axis=0)    # (L, 1, D) f32

    # Pad classifier output dim 6 -> 128 so the logits store is lane-dense.
    w2_pad = jnp.zeros((D, C_PAD), jnp.float32).at[:, :C].set(params["clf_w2"]).astype(jnp.bfloat16)
    b2_pad = jnp.zeros((1, C_PAD), jnp.float32).at[:, :C].set(params["clf_b2"])

    logits_pad = pl.pallas_call(
        fused_forward_kernel,
        out_shape=jax.ShapeDtypeStruct((B, C_PAD), jnp.float32),
    )(adj.astype(jnp.float32), h,
      gnn_w, gnn_b,
      params["clf_w1"].astype(jnp.bfloat16), params["clf_b1"],
      w2_pad, b2_pad)

    logits = logits_pad[:, :C]                                            # (B, 6)

    if require_loss:
        # GeneralLoss('CrossEntropy') — tiny scalar reduction, plain JAX glue.
        logz = jax.nn.logsumexp(logits, axis=-1)
        nll = logz - jnp.take_along_axis(logits, tgt[:, None], axis=-1)[:, 0]
        loss = jnp.mean(nll)
        return logits, loss
    return logits


# ----------------------------------------------------------------------------
# Deterministic parameter / input construction
# ----------------------------------------------------------------------------
def make_params(key, vocab_size, num_hidden, num_layers, num_classes):
    keys = jax.random.split(key, 3 + 3 * num_layers + 4)
    ki = iter(keys)
    scale = 0.1
    params = {
        "emb": scale * jax.random.normal(next(ki), (vocab_size, num_hidden), jnp.float32),
        "gnn_layers": [],
    }
    for _ in range(num_layers):
        ws = scale * jax.random.normal(next(ki), (num_hidden, num_hidden), jnp.float32)
        wn = scale * jax.random.normal(next(ki), (num_hidden, num_hidden), jnp.float32)
        b = scale * jax.random.normal(next(ki), (1, num_hidden), jnp.float32)
        params["gnn_layers"].append((ws, wn, b))
    params["clf_w1"] = scale * jax.random.normal(next(ki), (num_hidden, num_hidden), jnp.float32)
    params["clf_b1"] = scale * jax.random.normal(next(ki), (1, num_hidden), jnp.float32)
    params["clf_w2"] = scale * jax.random.normal(next(ki), (num_hidden, num_classes), jnp.float32)
    params["clf_b2"] = scale * jax.random.normal(next(ki), (1, num_classes), jnp.float32)
    return params


if __name__ == "__main__":
    # Small synthetic config: B=2 graphs, N=16 nodes each, hidden=32,
    # vocab=50, 2 GraphSAGE layers, 6 output classes.
    B, N, D, V, L, C = 2, 16, 32, 50, 2, 6
    key = jax.random.PRNGKey(0)
    k_par, k_tok, k_adj, k_tgt = jax.random.split(key, 4)

    params = make_params(k_par, V, D, L, C)

    token_ids = jax.random.randint(k_tok, (B, N), 0, V)               # node token ids
    # deterministic sparse-ish symmetric adjacency with self loops
    # (note: self node included in the neighbor mean, as in the original kernel)
    rand = jax.random.uniform(k_adj, (B, N, N))
    adj = (rand + jnp.swapaxes(rand, 1, 2) > 1.4).astype(jnp.float32)
    adj = jnp.maximum(adj, jnp.eye(N, dtype=jnp.float32)[None])
    tgt = jax.random.randint(k_tgt, (B,), 0, C)

    logits, loss = text_classifier_forward(params, token_ids, adj, tgt, require_loss=True)
    jax.block_until_ready((logits, loss))

    assert logits.shape == (B, C), logits.shape
    assert loss.shape == (), loss.shape
    print("KERNEL_OK")
</pallas_src>

<mosaic_0001>
module attributes {stable_mosaic.version = 11 : i64} {
  func.func @fused_forward_kernel(%arg0: memref<2x16x16xf32, #tpu.memory_space<vmem>>, %arg1: memref<32x32xbf16, #tpu.memory_space<vmem>>, %arg2: memref<2x64x32xbf16, #tpu.memory_space<vmem>>, %arg3: memref<2x1x32xf32, #tpu.memory_space<vmem>>, %arg4: memref<32x32xbf16, #tpu.memory_space<vmem>>, %arg5: memref<1x32xf32, #tpu.memory_space<vmem>>, %arg6: memref<32x128xbf16, #tpu.memory_space<vmem>>, %arg7: memref<1x128xf32, #tpu.memory_space<vmem>>, %arg8: memref<2x128xf32, #tpu.memory_space<vmem>>) attributes {dimension_semantics = [], scalar_prefetch = 0 : i64, scratch_operands = 0 : i64, tpu.core_type = #tpu.core_type<tc>} {
    %c0 = arith.constant 0 : index
    %c0_0 = arith.constant 0 : index
    %c0_1 = arith.constant 0 : index
    %0 = vector.load %arg0[%c0, %c0_0, %c0_1] : memref<2x16x16xf32, #tpu.memory_space<vmem>>, vector<2x16x16xf32>
    %cst = arith.constant dense<0.000000e+00> : vector<2x16xf32>
    %1 = vector.multi_reduction <add>, %0, %cst [2] : vector<2x16x16xf32> to vector<2x16xf32>
    %2 = vector.shape_cast %1 : vector<2x16xf32> to vector<2x16x1xf32>
    %cst_2 = arith.constant 1.000000e+00 : f32
    %3 = vector.broadcast %cst_2 : f32 to vector<2x16x1xf32>
    %4 = arith.maximumf %2, %3 : vector<2x16x1xf32>
    %5 = tpu.reciprocal %4 {approx = true} : vector<2x16x1xf32> -> vector<2x16x1xf32>
    %6 = vector.broadcast %5 : vector<2x16x1xf32> to vector<2x16x16xf32>
    %7 = arith.mulf %0, %6 : vector<2x16x16xf32>
    %8 = arith.truncf %7 : vector<2x16x16xf32> to vector<2x16x16xbf16>
    %c0_3 = arith.constant 0 : index
    %c0_4 = arith.constant 0 : index
    %9 = vector.load %arg1[%c0_3, %c0_4] : memref<32x32xbf16, #tpu.memory_space<vmem>>, vector<32x32xbf16>
    %10 = vector.extract_strided_slice %8 {offsets = [0, 0, 0], sizes = [1, 16, 16], strides = [1, 1, 1]} : vector<2x16x16xbf16> to vector<1x16x16xbf16>
    %11 = vector.shape_cast %10 : vector<1x16x16xbf16> to vector<16x16xbf16>
    %12 = vector.extract_strided_slice %9 {offsets = [0, 0], sizes = [16, 32], strides = [1, 1]} : vector<32x32xbf16> to vector<16x32xbf16>
    %cst_5 = arith.constant dense<0.000000e+00> : vector<16x32xf32>
    %13 = tpu.matmul %11, %12, %cst_5 {dimension_numbers = #tpu.dot_dimension_numbers<[1], [0], [0], [1], [0, 0, 1, 1], [], []>} : vector<16x16xbf16>, vector<16x32xbf16>, vector<16x32xf32> -> vector<16x32xf32>
    %14 = vector.extract_strided_slice %8 {offsets = [1, 0, 0], sizes = [1, 16, 16], strides = [1, 1, 1]} : vector<2x16x16xbf16> to vector<1x16x16xbf16>
    %15 = vector.shape_cast %14 : vector<1x16x16xbf16> to vector<16x16xbf16>
    %16 = vector.extract_strided_slice %9 {offsets = [16, 0], sizes = [16, 32], strides = [1, 1]} : vector<32x32xbf16> to vector<16x32xbf16>
    %cst_6 = arith.constant dense<0.000000e+00> : vector<16x32xf32>
    %17 = tpu.matmul %15, %16, %cst_6 {dimension_numbers = #tpu.dot_dimension_numbers<[1], [0], [0], [1], [0, 0, 1, 1], [], []>} : vector<16x16xbf16>, vector<16x32xbf16>, vector<16x32xf32> -> vector<16x32xf32>
    %18 = tpu.concatenate %13, %17 in 0 : vector<16x32xf32>, vector<16x32xf32> -> vector<32x32xf32>
    %19 = arith.truncf %18 : vector<32x32xf32> to vector<32x32xbf16>
    %20 = tpu.concatenate %9, %19 in 1 : vector<32x32xbf16>, vector<32x32xbf16> -> vector<32x64xbf16>
    %c0_7 = arith.constant 0 : index
    %c0_8 = arith.constant 0 : index
    %c0_9 = arith.constant 0 : index
    %21 = vector.load %arg2[%c0_7, %c0_8, %c0_9] : memref<2x64x32xbf16, #tpu.memory_space<vmem>>, vector<1x64x32xbf16>
    %22 = vector.shape_cast %21 : vector<1x64x32xbf16> to vector<64x32xbf16>
    %cst_10 = arith.constant dense<0.000000e+00> : vector<32x32xf32>
    %23 = tpu.matmul %20, %22, %cst_10 {dimension_numbers = #tpu.dot_dimension_numbers<[1], [0], [0], [1], [0, 0, 1, 1], [], []>} : vector<32x64xbf16>, vector<64x32xbf16>, vector<32x32xf32> -> vector<32x32xf32>
    %c0_11 = arith.constant 0 : index
    %c0_12 = arith.constant 0 : index
    %c0_13 = arith.constant 0 : index
    %24 = vector.load %arg3[%c0_11, %c0_12, %c0_13] : memref<2x1x32xf32, #tpu.memory_space<vmem>>, vector<1x1x32xf32>
    %25 = vector.shape_cast %24 : vector<1x1x32xf32> to vector<1x32xf32>
    %26 = vector.broadcast %25 : vector<1x32xf32> to vector<32x32xf32>
    %27 = arith.addf %23, %26 : vector<32x32xf32>
    %cst_14 = arith.constant 0.000000e+00 : f32
    %28 = vector.broadcast %cst_14 : f32 to vector<32x32xf32>
    %29 = arith.maximumf %27, %28 : vector<32x32xf32>
    %30 = arith.truncf %29 : vector<32x32xf32> to vector<32x32xbf16>
    %31 = vector.extract_strided_slice %8 {offsets = [0, 0, 0], sizes = [1, 16, 16], strides = [1, 1, 1]} : vector<2x16x16xbf16> to vector<1x16x16xbf16>
    %32 = vector.shape_cast %31 : vector<1x16x16xbf16> to vector<16x16xbf16>
    %33 = vector.extract_strided_slice %30 {offsets = [0, 0], sizes = [16, 32], strides = [1, 1]} : vector<32x32xbf16> to vector<16x32xbf16>
    %cst_15 = arith.constant dense<0.000000e+00> : vector<16x32xf32>
    %34 = tpu.matmul %32, %33, %cst_15 {dimension_numbers = #tpu.dot_dimension_numbers<[1], [0], [0], [1], [0, 0, 1, 1], [], []>} : vector<16x16xbf16>, vector<16x32xbf16>, vector<16x32xf32> -> vector<16x32xf32>
    %35 = vector.extract_strided_slice %8 {offsets = [1, 0, 0], sizes = [1, 16, 16], strides = [1, 1, 1]} : vector<2x16x16xbf16> to vector<1x16x16xbf16>
    %36 = vector.shape_cast %35 : vector<1x16x16xbf16> to vector<16x16xbf16>
    %37 = vector.extract_strided_slice %30 {offsets = [16, 0], sizes = [16, 32], strides = [1, 1]} : vector<32x32xbf16> to vector<16x32xbf16>
    %cst_16 = arith.constant dense<0.000000e+00> : vector<16x32xf32>
    %38 = tpu.matmul %36, %37, %cst_16 {dimension_numbers = #tpu.dot_dimension_numbers<[1], [0], [0], [1], [0, 0, 1, 1], [], []>} : vector<16x16xbf16>, vector<16x32xbf16>, vector<16x32xf32> -> vector<16x32xf32>
    %39 = tpu.concatenate %34, %38 in 0 : vector<16x32xf32>, vector<16x32xf32> -> vector<32x32xf32>
    %40 = arith.truncf %39 : vector<32x32xf32> to vector<32x32xbf16>
    %41 = tpu.concatenate %30, %40 in 1 : vector<32x32xbf16>, vector<32x32xbf16> -> vector<32x64xbf16>
    %c1 = arith.constant 1 : index
    %c0_17 = arith.constant 0 : index
    %c0_18 = arith.constant 0 : index
    %42 = vector.load %arg2[%c1, %c0_17, %c0_18] : memref<2x64x32xbf16, #tpu.memory_space<vmem>>, vector<1x64x32xbf16>
    %43 = vector.shape_cast %42 : vector<1x64x32xbf16> to vector<64x32xbf16>
    %cst_19 = arith.constant dense<0.000000e+00> : vector<32x32xf32>
    %44 = tpu.matmul %41, %43, %cst_19 {dimension_numbers = #tpu.dot_dimension_numbers<[1], [0], [0], [1], [0, 0, 1, 1], [], []>} : vector<32x64xbf16>, vector<64x32xbf16>, vector<32x32xf32> -> vector<32x32xf32>
    %c1_20 = arith.constant 1 : index
    %c0_21 = arith.constant 0 : index
    %c0_22 = arith.constant 0 : index
    %45 = vector.load %arg3[%c1_20, %c0_21, %c0_22] : memref<2x1x32xf32, #tpu.memory_space<vmem>>, vector<1x1x32xf32>
    %46 = vector.shape_cast %45 : vector<1x1x32xf32> to vector<1x32xf32>
    %47 = vector.broadcast %46 : vector<1x32xf32> to vector<32x32xf32>
    %48 = arith.addf %44, %47 : vector<32x32xf32>
    %cst_23 = arith.constant 0.000000e+00 : f32
    %49 = vector.broadcast %cst_23 : f32 to vector<32x32xf32>
    %50 = arith.maximumf %48, %49 : vector<32x32xf32>
    %51 = arith.truncf %50 : vector<32x32xf32> to vector<32x32xbf16>
    %52 = vector.extract_strided_slice %51 {offsets = [0, 0], sizes = [16, 32], strides = [1, 1]} : vector<32x32xbf16> to vector<16x32xbf16>
    %cst_24 = arith.constant dense<0xFF80> : vector<32xbf16>
    %53 = vector.multi_reduction <maximumf>, %52, %cst_24 [0] : vector<16x32xbf16> to vector<32xbf16>
    %54 = vector.shape_cast %53 : vector<32xbf16> to vector<1x32xbf16>
    %55 = vector.extract_strided_slice %51 {offsets = [16, 0], sizes = [16, 32], strides = [1, 1]} : vector<32x32xbf16> to vector<16x32xbf16>
    %cst_25 = arith.constant dense<0xFF80> : vector<32xbf16>
    %56 = vector.multi_reduction <maximumf>, %55, %cst_25 [0] : vector<16x32xbf16> to vector<32xbf16>
    %57 = vector.shape_cast %56 : vector<32xbf16> to vector<1x32xbf16>
    %58 = tpu.concatenate %54, %57 in 0 : vector<1x32xbf16>, vector<1x32xbf16> -> vector<2x32xbf16>
    %c0_26 = arith.constant 0 : index
    %c0_27 = arith.constant 0 : index
    %59 = vector.load %arg4[%c0_26, %c0_27] : memref<32x32xbf16, #tpu.memory_space<vmem>>, vector<32x32xbf16>
    %cst_28 = arith.constant dense<0.000000e+00> : vector<2x32xf32>
    %60 = tpu.matmul %58, %59, %cst_28 {dimension_numbers = #tpu.dot_dimension_numbers<[1], [0], [0], [1], [0, 0, 1, 1], [], []>} : vector<2x32xbf16>, vector<32x32xbf16>, vector<2x32xf32> -> vector<2x32xf32>
    %c0_29 = arith.constant 0 : index
    %c0_30 = arith.constant 0 : index
    %61 = vector.load %arg5[%c0_29, %c0_30] : memref<1x32xf32, #tpu.memory_space<vmem>>, vector<1x32xf32>
    %62 = vector.broadcast %61 : vector<1x32xf32> to vector<2x32xf32>
    %63 = arith.addf %60, %62 : vector<2x32xf32>
    %cst_31 = arith.constant 0.000000e+00 : f32
    %64 = vector.broadcast %cst_31 : f32 to vector<2x32xf32>
    %65 = arith.maximumf %63, %64 : vector<2x32xf32>
    %66 = arith.truncf %65 : vector<2x32xf32> to vector<2x32xbf16>
    %c0_32 = arith.constant 0 : index
    %c0_33 = arith.constant 0 : index
    %67 = vector.load %arg6[%c0_32, %c0_33] : memref<32x128xbf16, #tpu.memory_space<vmem>>, vector<32x128xbf16>
    %cst_34 = arith.constant dense<0.000000e+00> : vector<2x128xf32>
    %68 = tpu.matmul %66, %67, %cst_34 {dimension_numbers = #tpu.dot_dimension_numbers<[1], [0], [0], [1], [0, 0, 1, 1], [], []>} : vector<2x32xbf16>, vector<32x128xbf16>, vector<2x128xf32> -> vector<2x128xf32>
    %c0_35 = arith.constant 0 : index
    %c0_36 = arith.constant 0 : index
    %69 = vector.load %arg7[%c0_35, %c0_36] : memref<1x128xf32, #tpu.memory_space<vmem>>, vector<1x128xf32>
    %70 = vector.broadcast %69 : vector<1x128xf32> to vector<2x128xf32>
    %71 = arith.addf %68, %70 : vector<2x128xf32>
    %c0_37 = arith.constant 0 : index
    %c0_38 = arith.constant 0 : index
    %72 = vector.load %arg8[%c0_37, %c0_38] : memref<2x128xf32, #tpu.memory_space<vmem>>, vector<2x128xf32>
    tpu.vector_store %arg8[%c0_37, %c0_38], %71 {strides = array<i32>} : memref<2x128xf32, #tpu.memory_space<vmem>>, vector<2x128xf32>,
    return
  }
}

</mosaic_0001>

<bundles_post_ra>
// kernel: tpu_custom_call.1
= control target key start
LH: loop header
LB: loop body
LE: loop exit
PB: predicated region body
PF: predicated region fallthrough
CT: control target
= control target key end

     0   :  { %vm36_vm0 = vcmask 130048   ;;  %s1002_s0 = inlined_call_operand.vmem [shape: f32[2,16,16], index: 0, kind: input, shape index: {}]   ;;  %s1003_s1 = inlined_call_operand.vmem [shape: bf16[32,32], index: 1, kind: input, shape index: {}]   ;;  %s1004_s2 = inlined_call_operand.vmem [shape: bf16[2,64,32], index: 2, kind: input, shape index: {}]   ;;  %s1005_s3 = inlined_call_operand.vmem [shape: f32[2,1,32], index: 3, kind: input, shape index: {}]   ;;  %s1006_s4 = inlined_call_operand.vmem [shape: bf16[32,32], index: 4, kind: input, shape index: {}]   ;;  %s1007_s5 = inlined_call_operand.vmem [shape: f32[1,32], index: 5, kind: input, shape index: {}]   ;;  %s1008_s6 = inlined_call_operand.vmem [shape: bf16[32,128], index: 6, kind: input, shape index: {}]   ;;  %s1009_s7 = inlined_call_operand.vmem [shape: f32[1,128], index: 7, kind: input, shape index: {}]   ;;  %s1010_s8 = inlined_call_operand.hbm [shape: f32[2,128], index: 8, kind: output, shape index: {}]  }
   0x1   :  { %v34_v0 = vld [vmem:[%s1002_s0 + $0x10] sm:$0xff]  ;;  %v32_v1 = vld [vmem:[%s1002_s0] sm:$0xff]  ;;  %v35_v2 = vld [vmem:[%s1002_s0 + $0x18] sm:$0xff] }
   0x2   :  { %v43_v3 = vsel %vm36_vm0, %v34_v0, 0.0  ;;  %v37_v4 = vsel %vm36_vm0, %v32_v1, 0.0  ;;  %v33_v5 = vld [vmem:[%s1002_s0 + $0x8] sm:$0xff]  ;;  %v46_v6 = vsel %vm36_vm0, %v35_v2, 0.0 }
   0x3   :  { %44 = vadd.xlane.f32.xlu1 %v43_v3  ;;  %38 = vadd.xlane.f32.xlu0 %v37_v4  ;;  %v40_v7 = vsel %vm36_vm0, %v33_v5, 0.0 }
   0x7   :  { %47 = vadd.xlane.f32.xlu1 %v46_v6  ;;  %41 = vadd.xlane.f32.xlu0 %v40_v7 }
   0x8   :  { %13 = vsyncpa [#allocation3], 0  ;;  %v900_v8 = vld [vmem:[%s1003_s1] sm:$0xff]   ;;  %v905_v9 = vld [vmem:[%s1003_s1 + $0x8] sm:$0xff]   ;;  %v832_v10 = vmov 0.0   ;;  %vm833_vm1 = vmmov 0  }
   0x9   :  { %720 = vmatprep.subr.bf16.mxu0 %v832_v10  ;;  %726 = vmatprep.subr.bf16.mxu1 %v832_v10  ;;  %v790_v29 = vld [vmem:[%s1004_s2 + $0x18] sm:$0xff]   ;;  %v791_v30 = vld [vmem:[%s1004_s2 + $0x10] sm:$0xff]   ;;  %v792_v31 = vld [vmem:[%s1004_s2 + $0x8] sm:$0xff]   ;;  %s834_s23 = smov 32   ;;  %vm175_vm2 = vcmask 261120   ;;  %vm221_vm3 = vcmask 523264  }
   0xa   :  { %721 = vmatpush3.bf16.msra.mxu0 %v900_v8  ;;  %727 = vmatpush3.bf16.msra.mxu1 %v905_v9  ;;  %v793_v32 = vld [vmem:[%s1004_s2] sm:$0xff]   ;;  %v794_v62 = vld [vmem:[%s1004_s2 + $0x38] sm:$0xff]   ;;  %v795_v63 = vld [vmem:[%s1004_s2 + $0x30] sm:$0xff]   ;;  %vm504_vm4 = vcmask 1040384   ;;  %vm505_vm5 = vsmask.f32 256 }
   0xb   :  { %722 = vmatprep.mubr.msk.bf16.mxu0 %vm833_vm1, %v832_v10  ;;  %728 = vmatprep.mubr.msk.bf16.mxu1 %vm833_vm1, %v832_v10  ;;  %v661_v49 = vld [vmem:[%s1005_s3] ss:$0 sm:$0xff]  ;;  %vm506_vm6 = vmand %vm504_vm4, %vm505_vm5  ;;  %s835_s21 = smov [#allocation2]  }
   0xc   :  { %744 = vmatprep.subr.bf16.mxu1 %v832_v10  ;;  %732 = vmatprep.subr.bf16.mxu0 %v790_v29 }
  0x8c   :  { %v45_v11 = vpop.xlane.xlu1 %44  ;;  %v39_v12 = vpop.xlane.xlu0 %38 }
  0x8d   :  { %v51_v13 = vmax.f32 %v45_v11, 1.0  ;;  %v49_v14 = vmax.f32 %v39_v12, 1.0 }
  0x8f   :  { %802 = vrcp.f32 %v51_v13 }
  0x90   :  { %v48_v15 = vpop.xlane.xlu1 %47  ;;  %v42_v16 = vpop.xlane.xlu0 %41  ;;  %804 = vrcp.f32 %v49_v14 }
  0x91   :  { %v52_v17 = vmax.f32 %v48_v15, 1.0  ;;  %v50_v18 = vmax.f32 %v42_v16, 1.0 }
  0x93   :  { %806 = vrcp.f32 %v52_v17  ;;  %v798_v17 = vld [vmem:[%s1006_s4 + $0x8] sm:$0xff]  }
  0x94   :  { %808 = vrcp.f32 %v50_v18  ;;  %v799_v18 = vld [vmem:[%s1006_s4] sm:$0xff]  }
  0x9c   :  { %v803_v19 = vpop.eup %802 }
  0x9d   :  { %v805_v20 = vpop.eup %804  ;;  %v59_v23 = vmul.f32 %v803_v19, %v34_v0  ;;  %v796_v0 = vld [vmem:[%s1004_s2 + $0x28] sm:$0xff]  }
  0x9e   :  { %v57_v25 = vmul.f32 %v805_v20, %v32_v1  ;;  %v797_v1 = vld [vmem:[%s1004_s2 + $0x20] sm:$0xff]  }
  0x9f   :  { %v679_v20 = vld [vmem:[%s1005_s3 + $0x1] ss:$0 sm:$0xff] }
  0xa0   :  { %v807_v21 = vpop.eup %806 }
  0xa1   :  { %v809_v22 = vpop.eup %808  ;;  %v60_v24 = vmul.f32 %v807_v21, %v35_v2 }
  0xa2   :  { %v58_v26 = vmul.f32 %v809_v22, %v33_v5 }
  0xa3   :  { %v62_v27 = vpack.c.bf16 %v60_v24, %v59_v23 }
  0xa4   :  { %v61_v28 = vpack.c.bf16 %v58_v26, %v57_v25 }
  0xa5   :  { %729 = vmatmul.mubr.msk.bf16.vlgmr.msra.gmra.mxu1 %vm36_vm0, %v62_v27 }
  0xa6   :  { %723 = vmatmul.mubr.msk.bf16.vlgmr.msra.gmra.mxu0 %vm36_vm0, %v61_v28  ;;  %746 = vmatprep.mubr.msk.bf16.mxu1 %vm833_vm1, %v832_v10 }
  0xa7   :  { %733 = vmatpush3.bf16.msra.mxu0 %v790_v29 }
  0xa8   :  { %734 = vmatprep.subr.bf16.mxu0 %v791_v30 }
  0xab   :  { %735 = vmatpush3.bf16.msra.mxu0 %v791_v30 }
  0xac   :  { %736 = vmatprep.subr.bf16.mxu0 %v792_v31 }
  0xaf   :  { %737 = vmatpush3.bf16.msra.mxu0 %v792_v31 }
  0xb0   :  { %738 = vmatprep.subr.bf16.mxu0 %v793_v32 }
  0xb3   :  { %739 = vmatpush3.bf16.msra.mxu0 %v793_v32 }
  0xb4   :  { %756 = vmatprep.subr.bf16.mxu0 %v794_v62 }
 0x165   :  { %v160_v33 = vpop.f32.mrf.mxu1 }
 0x166   :  { %v110_v34 = vpop.f32.mrf.mxu0 }
 0x167   :  { %v730_v35 = vpop.f32.mrf.mxu1 }
 0x168   :  { %v724_v36 = vpop.f32.mrf.mxu0 }
 0x169   :  { %v163_v37 = vpop.f32.mrf.mxu1 }
 0x16a   :  { %v113_v38 = vpop.f32.mrf.mxu0  ;;  %v168_v39 = vpack.c.bf16 %v163_v37, %v160_v33 }
 0x16b   :  { %v167_v40 = vpack.c.bf16 %v113_v38, %v110_v34  ;;  %v731_v41 = vpop.f32.mrf.mxu1 }
 0x16c   :  { %v725_v42 = vpop.f32.mrf.mxu0  ;;  %173 = vrot.lane.b32.xlu1 %v168_v39, %s834_s23 }
 0x16d   :  { %171 = vrot.lane.b32.xlu0 %v167_v40, %s834_s23 }
 0x1de   :  { %v174_v43 = vpop.permute.xlu1 %173 }
 0x1df   :  { %v181_v44 = vsel %vm175_vm2, %v905_v9, %v174_v43  ;;  %v172_v45 = vpop.permute.xlu0 %171 }
 0x1e0   :  { %v178_v46 = vsel %vm175_vm2, %v900_v8, %v172_v45 }
 0x1e1   :  { %740 = vmatprep.mubr.msk.bf16.mxu0 %vm221_vm3, %v178_v46 }
 0x1e2   :  { %741 = vmatmul.mubr.msk.bf16.vlgmr.msra.gmra.mxu0 %vm221_vm3, %v181_v44 }
 0x1e3   :  { %757 = vmatpush3.bf16.msra.mxu0 %v794_v62 }
 0x1e4   :  { %758 = vmatprep.subr.bf16.mxu0 %v795_v63 }
 0x1e7   :  { %759 = vmatpush3.bf16.msra.mxu0 %v795_v63 }
 0x1e8   :  { %760 = vmatprep.subr.bf16.mxu0 %v796_v0 }
 0x1eb   :  { %761 = vmatpush3.bf16.msra.mxu0 %v796_v0 }
 0x1ec   :  { %762 = vmatprep.subr.bf16.mxu0 %v797_v1 }
 0x1ef   :  { %763 = vmatpush3.bf16.msra.mxu0 %v797_v1 }
 0x2a2   :  { %v742_v47 = vpop.f32.mrf.mxu0 }
 0x2a3   :  { %v269_v55 = vadd.f32 %v742_v47, %v661_v49 }
 0x2a4   :  { %v260_v48 = vpop.f32.mrf.mxu0 }
 0x2a5   :  { %v261_v51 = vadd.f32 %v661_v49, %v260_v48  ;;  %v277_v60 = vmax.f32 %v269_v55, 0.0 }
 0x2a6   :  { %v743_v50 = vpop.f32.mrf.mxu0 }
 0x2a7   :  { %v272_v53 = vadd.f32 %v743_v50, %v661_v49  ;;  %v275_v56 = vmax.f32 %v261_v51, 0.0 }
 0x2a8   :  { %v263_v52 = vpop.f32.mrf.mxu0 }
 0x2a9   :  { %v264_v54 = vadd.f32 %v661_v49, %v263_v52  ;;  %v278_v58 = vmax.f32 %v272_v53, 0.0 }
 0x2ab   :  { %v276_v57 = vmax.f32 %v264_v54, 0.0  ;;  %v280_v61 = vpack.c.bf16 %v278_v58, %v277_v60  ;;  %v801_v58 = vld [vmem:[%s1008_s6] sm:$0xff]  }
 0x2ad   :  { %v279_v59 = vpack.c.bf16 %v276_v57, %v275_v56  ;;  %v800_v57 = vld [vmem:[%s1008_s6 + $0x8] sm:$0xff]   ;;  %s649_s6 = sshll.u32 %s835_s21, 4  ;;  %s650_s6 = int_to_ptr.vmem [resolvable:$true] %s649_s6 }
 0x2ae   :  { %p815_p1 = scmp.lt.s32.totalorder %s650_s6, %s650_s6 }
 0x2af   :  { %745 = vmatpush3.bf16.msra.mxu1 %v279_v59 }
 0x2b0   :  { %750 = vmatprep.subr.bf16.mxu1 %v832_v10 }
 0x2b2   :  { %747 = vmatmul.mubr.msk.bf16.vlgmr.msra.gmra.mxu1 %vm36_vm0, %v61_v28 }
 0x2b3   :  { %751 = vmatpush3.bf16.msra.mxu1 %v280_v61  ;;  %752 = vmatprep.mubr.msk.bf16.mxu1 %vm833_vm1, %v832_v10 }
 0x2b4   :  { %768 = vmatprep.subr.bf16.mxu1 %v832_v10 }
 0x2ba   :  { %753 = vmatmul.mubr.msk.bf16.vlgmr.msra.gmra.mxu1 %vm36_vm0, %v62_v27 }
 0x2bb   :  { %772 = vmatprep.mubr.msk.bf16.mxu1 %vm833_vm1, %v832_v10  ;;  %769 = vmatpush3.bf16.msra.mxu1 %v798_v17 }
 0x2bc   :  { %770 = vmatprep.subr.bf16.mxu1 %v832_v10 }
 0x2bf   :  { %771 = vmatpush3.bf16.msra.mxu1 %v799_v18 }
 0x2c0   :  { %776 = vmatprep.subr.bf16.mxu1 %v832_v10 }
 0x372   :  { %v315_v2 = vpop.f32.mrf.mxu1 }
 0x374   :  { %v748_v3 = vpop.f32.mrf.mxu1 }
 0x376   :  { %v318_v4 = vpop.f32.mrf.mxu1 }
 0x377   :  { %v363_v5 = vpack.c.bf16 %v318_v4, %v315_v2 }
 0x378   :  { %v749_v6 = vpop.f32.mrf.mxu1 }
 0x379   :  { %367 = vrot.lane.b32.xlu1 %v363_v5, %s834_s23 }
 0x37a   :  { %v356_v7 = vpop.f32.mrf.mxu1 }
 0x37c   :  { %v754_v8 = vpop.f32.mrf.mxu1 }
 0x37e   :  { %v359_v9 = vpop.f32.mrf.mxu1 }
 0x37f   :  { %v364_v11 = vpack.c.bf16 %v359_v9, %v356_v7 }
 0x380   :  { %v755_v12 = vpop.f32.mrf.mxu1 }
 0x381   :  { %369 = vrot.lane.b32.xlu1 %v364_v11, %s834_s23 }
 0x3eb   :  { %v368_v13 = vpop.permute.xlu1 %367 }
 0x3ec   :  { %v373_v14 = vsel %vm175_vm2, %v279_v59, %v368_v13  ;;  %v686_v59 = vld [vmem:[%s1007_s5] ss:$0 sm:$0xff]  ;;  %s810_s5 = scalar_lea.vmem %s650_s6, 32 }
 0x3ed   :  { %764 = vmatprep.mubr.msk.bf16.mxu0 %vm221_vm3, %v373_v14  ;;  %p811_p0 = scmp.ne.s32.totalorder %s650_s6, %s810_s5  ;;  %p816_p2 = scmp.lt.s32.totalorder %s810_s5, %s810_s5 }
 0x3ef   :  { %p817_p3 = por %p816_p2, %p815_p1 }
 0x3f1   :  { %p818_p4 = pnand %p817_p3, %p811_p0 }
 0x3f3   :  { %v370_v15 = vpop.permute.xlu1 %369 }
 0x3f4   :  { %v376_v16 = vsel %vm175_vm2, %v280_v61, %v370_v15 }
 0x3f5   :  { %765 = vmatmul.mubr.msk.bf16.vlgmr.msra.gmra.mxu0 %vm221_vm3, %v376_v16 }
 0x4b5   :  { %v766_v19 = vpop.f32.mrf.mxu0 }
 0x4b6   :  { %v465_v22 = vadd.f32 %v766_v19, %v679_v20 }
 0x4b7   :  { %v456_v21 = vpop.f32.mrf.mxu0 }
 0x4b8   :  { %v457_v24 = vadd.f32 %v679_v20, %v456_v21  ;;  %v473_v27 = vmax.f32 %v465_v22, 0.0 }
 0x4b9   :  { %v767_v23 = vpop.f32.mrf.mxu0 }
 0x4ba   :  { %v468_v25 = vadd.f32 %v767_v23, %v679_v20  ;;  %v471_v30 = vmax.f32 %v457_v24, 0.0 }
 0x4bb   :  { %v459_v26 = vpop.f32.mrf.mxu0 }
 0x4bc   :  { %v474_v28 = vmax.f32 %v468_v25, 0.0  ;;  %v460_v29 = vadd.f32 %v679_v20, %v459_v26 }
 0x4be   :  { %v476_v31 = vpack.c.bf16 %v474_v28, %v473_v27  ;;  %v472_v32 = vmax.f32 %v460_v29, 0.0 }
 0x4c0   :  { %v492_v33 = vsel %vm175_vm2, %v476_v31, 4286644096  ;;  %v475_v34 = vpack.c.bf16 %v472_v32, %v471_v30 }
 0x4c1   :  { %v494_v35 = vunpack.i.l.bf16 %v492_v33  ;;  %v495_v36 = vunpack.i.h.bf16 %v492_v33 }
 0x4c2   :  { %v479_v37 = vsel %vm175_vm2, %v475_v34, 4286644096 }
 0x4c3   :  { %v496_v38 = vmax.f32 %v494_v35, %v495_v36  ;;  %v481_v39 = vunpack.i.l.bf16 %v479_v37  ;;  %v482_v40 = vunpack.i.h.bf16 %v479_v37 }
 0x4c5   :  { %v497_v41 = vrot.slane %v496_v38, 4  ;;  %v483_v42 = vmax.f32 %v481_v39, %v482_v40 }
 0x4c7   :  { %v498_v43 = vmax.f32 %v496_v38, %v497_v41  ;;  %v484_v44 = vrot.slane %v483_v42, 4 }
 0x4c9   :  { %v499_v45 = vrot.slane %v498_v43, 2  ;;  %v485_v46 = vmax.f32 %v483_v42, %v484_v44 }
 0x4cb   :  { %v500_v47 = vmax.f32 %v498_v43, %v499_v45  ;;  %v486_v48 = vrot.slane %v485_v46, 2 }
 0x4cd   :  { %v487_v49 = vmax.f32 %v485_v46, %v486_v48  ;;  %v501_v50 = vrot.slane %v500_v47, 1 }
 0x4cf   :  { %v488_v51 = vrot.slane %v487_v49, 1  ;;  %v502_v52 = vmax.f32 %v500_v47, %v501_v50 }
 0x4d1   :  { %v489_v53 = vmax.f32 %v487_v49, %v488_v51  ;;  %v503_v55 = vpack.i.bf16 %v502_v52, %v502_v52 }
 0x4d3   :  { %v490_v54 = vpack.i.bf16 %v489_v53, %v489_v53 }
 0x4d5   :  { %v507_v56 = vsel %vm506_vm6, %v490_v54, %v503_v55 }
 0x4d6   :  { %773 = vmatmul.mubr.msk.bf16.vlgmr.msra.gmra.mxu1 %vm175_vm2, %v507_v56 }
 0x4d7   :  { %780 = vmatprep.mubr.msk.bf16.mxu1 %vm833_vm1, %v832_v10  ;;  %777 = vmatpush3.bf16.msra.mxu1 %v800_v57 }
 0x4d8   :  { %778 = vmatprep.subr.bf16.mxu1 %v832_v10  ;;  %v690_v10 = vld [vmem:[%s1009_s7] ss:$0 sm:$0xff] }
 0x4db   :  { %779 = vmatpush3.bf16.msra.mxu1 %v801_v58 }
 0x596   :  { %v568_v60 = vpop.f32.mrf.mxu1 }
 0x597   :  { %v569_v61 = vadd.f32 %v686_v59, %v568_v60 }
 0x598   :  { %v774_v62 = vpop.f32.mrf.mxu1 }
 0x599   :  { %v574_v63 = vmax.f32 %v569_v61, 0.0 }
 0x59a   :  { %v571_v0 = vpop.f32.mrf.mxu1 }
 0x59b   :  { %v575_v1 = vpack.c.bf16 %v574_v63, %v574_v63 }
 0x59c   :  { %v775_v2 = vpop.f32.mrf.mxu1 }
 0x59d   :  { %781 = vmatmul.mubr.msk.bf16.vlgmr.msra.gmra.mxu1 %vm175_vm2, %v575_v1 }
 0x65d   :  { %v636_v3 = vpop.f32.mrf.mxu1 }
 0x65e   :  { %v637_v4 = vadd.f32 %v690_v10, %v636_v3 }
 0x65f   :  { %v782_v5 = vpop.f32.mrf.mxu1 }
 0x660   :  { %642 = vst [vmem:[#allocation2] sm:$0x3] %v637_v4 }
 0x661   :  { %v639_v6 = vpop.f32.mrf.mxu1 }
 0x662   :  { %821 = shalt.err (!%p818_p4)
}
 0x663   :  { %652 = dma.vmem_to_hbm [thread:$0]  %s650_s6, 32, %s1010_s8, [#allocation3]   ;;  %v783_v7 = vpop.f32.mrf.mxu1 }
 0x664   :  { %830 = dma.done.wait [#allocation3], 32  }
 0x665   :  { %831 = vsyncadd [#allocation3], 4294967264 }
 0x666   :  { %656 = vsyncpa [#allocation3], 1 }

</bundles_post_ra>
